<compile_context>
chip_gen: v6e
topology: v6e:2x2x1
jax: 0.10.0
libtpu: 0.0.40
codegen_flags: <defaults>
</compile_context>

<pallas_src>
import functools
import math

import jax
import jax.numpy as jnp
import numpy as np
from jax.experimental import pallas as pl
from jax.experimental.pallas import tpu as pltpu


def _image_proj_kernel(x_ref, w_ref, b_ref, g_ref, beta_ref, out_ref, *,
                       eps, d, tokens_per_block):
    """Fused Linear(+bias) -> per-token LayerNorm for one group of tokens.

    x_ref    : (B, E)     f32 VMEM  (resident activations, same block every step)
    w_ref    : (E, T*D)   f32 VMEM  (column tile of the Linear weight)
    b_ref    : (1, T*D)   f32 VMEM  (bias slice)
    g_ref    : (1, D)     f32 VMEM  (LayerNorm gamma, resident)
    beta_ref : (1, D)     f32 VMEM  (LayerNorm beta, resident)
    out_ref  : (B, T*D)   f32 VMEM  (lane-dense output slab)
    """
    # Single MXU matmul for the whole token group, f32 accumulation.
    y = jnp.dot(x_ref[...], w_ref[...], preferred_element_type=jnp.float32)
    y = y + b_ref[...]                                  # (B, T*D)

    gamma = g_ref[...]                                  # (1, D)
    beta = beta_ref[...]                                # (1, D)

    # Per-token LayerNorm over the lane dim D.  T is a small compile-time
    # constant; static 128-aligned lane slices keep D on lanes (no relayout).
    for t in range(tokens_per_block):
        yt = y[:, t * d:(t + 1) * d]                    # (B, D)
        mean = jnp.mean(yt, axis=-1, keepdims=True)     # XLU reduction
        centered = yt - mean
        var = jnp.mean(centered * centered, axis=-1, keepdims=True)
        inv = jax.lax.rsqrt(var + eps)                  # EUP rsqrt
        out_ref[:, t * d:(t + 1) * d] = (
            centered * inv * gamma + beta).astype(out_ref.dtype)


def _choose_tokens_per_block(n, d, e, itemsize=4,
                             weight_tile_budget=6 * 1024 * 1024):
    """Largest token-group size T that (a) divides N, (b) keeps the output /
    weight block lane-legal ((T*D) % 128 == 0, or full width T == N), and
    (c) keeps the per-step weight tile within the VMEM budget."""
    divisors = [t for t in range(1, n + 1) if n % t == 0]
    legal = [t for t in divisors if (t * d) % 128 == 0 or t == n]
    within = [t for t in legal if e * t * d * itemsize <= weight_tile_budget]
    if within:
        return max(within)
    # Lane legality takes priority over the budget (worst case T == N).
    # TODO(synk): for very large weights with D not a multiple of 128, pad D
    # in the wrapper instead of falling back to a full-width tile.
    return min(legal)


@functools.partial(
    jax.jit, static_argnames=("num_tokens", "d", "eps", "tokens_per_block"))
def _image_projection_pallas(x, w_t, bias_2d, gamma_2d, beta_2d, *,
                             num_tokens, d, eps, tokens_per_block):
    B, E = x.shape
    T = tokens_per_block
    num_blocks = num_tokens // T
    kernel = functools.partial(
        _image_proj_kernel, eps=eps, d=d, tokens_per_block=T)
    return pl.pallas_call(
        kernel,
        out_shape=jax.ShapeDtypeStruct((B, num_tokens * d), jnp.float32),
        grid_spec=pltpu.PrefetchScalarGridSpec(
            num_scalar_prefetch=0,
            grid=(num_blocks,),
            in_specs=[
                pl.BlockSpec((B, E), lambda g: (0, 0)),        # x: resident
                pl.BlockSpec((E, T * d), lambda g: (0, g)),    # W column tile
                pl.BlockSpec((1, T * d), lambda g: (0, g)),    # bias slice
                pl.BlockSpec((1, d), lambda g: (0, 0)),        # LN gamma (resident)
                pl.BlockSpec((1, d), lambda g: (0, 0)),        # LN beta  (resident)
            ],
            out_specs=pl.BlockSpec((B, T * d), lambda g: (0, g)),
        ),
        compiler_params=pltpu.CompilerParams(
            # Token groups are independent -> megacore-shardable on v7x.
            dimension_semantics=("parallel",),
        ),
    )(x, w_t, bias_2d, gamma_2d, beta_2d)


class ImageProjection:
    """JAX/Pallas port of the PyTorch ImageProjection module."""

    def __init__(self, image_embed_dim=768, cross_attention_dim=768,
                 num_image_text_embeds=32, *, key, eps=1e-5):
        self.num_image_text_embeds = num_image_text_embeds
        self.cross_attention_dim = cross_attention_dim
        self.image_embed_dim = image_embed_dim
        self.eps = eps

        out_features = num_image_text_embeds * cross_attention_dim
        k_w, k_b = jax.random.split(key)
        bound = 1.0 / math.sqrt(image_embed_dim)   # nn.Linear default init range
        # Store the Linear weight pre-transposed as (in, out) so the kernel does x @ W.
        self.weight_t = jax.random.uniform(
            k_w, (image_embed_dim, out_features), minval=-bound, maxval=bound,
            dtype=jnp.float32)
        self.bias = jax.random.uniform(
            k_b, (out_features,), minval=-bound, maxval=bound, dtype=jnp.float32)
        # nn.LayerNorm default affine params.
        self.ln_gamma = jnp.ones((cross_attention_dim,), jnp.float32)
        self.ln_beta = jnp.zeros((cross_attention_dim,), jnp.float32)

    def __call__(self, image_embeds, *, tokens_per_block=None):
        B = image_embeds.shape[0]
        N, D, E = self.num_image_text_embeds, self.cross_attention_dim, self.image_embed_dim
        if tokens_per_block is None:
            tokens_per_block = _choose_tokens_per_block(N, D, E)
        y = _image_projection_pallas(
            image_embeds.astype(jnp.float32),
            self.weight_t,
            self.bias.reshape(1, N * D),
            self.ln_gamma.reshape(1, D),
            self.ln_beta.reshape(1, D),
            num_tokens=N, d=D, eps=self.eps,
            tokens_per_block=int(tokens_per_block),
        )
        # Free row-major reshape: (B, N*D) -> (B, N, D).
        return y.reshape(B, N, D)


def _reference(module, x):
    """Pure-JAX reference (Linear -> reshape -> LayerNorm)."""
    ref = (jnp.dot(x, module.weight_t, preferred_element_type=jnp.float32)
           + module.bias)
    ref = ref.reshape(x.shape[0], module.num_image_text_embeds,
                      module.cross_attention_dim)
    mean = ref.mean(-1, keepdims=True)
    var = ((ref - mean) ** 2).mean(-1, keepdims=True)
    ref = (ref - mean) / jnp.sqrt(var + module.eps)
    return ref * module.ln_gamma + module.ln_beta


if __name__ == "__main__":
    # Small, lane-friendly test shapes consistent with the module.
    batch = 2
    image_embed_dim = 64          # E
    cross_attention_dim = 128     # D (multiple of 128 -> lane-dense output)
    num_image_text_embeds = 4     # N

    key = jax.random.PRNGKey(0)
    k_mod, k_x, k_g, k_b = jax.random.split(key, 4)

    module = ImageProjection(
        image_embed_dim=image_embed_dim,
        cross_attention_dim=cross_attention_dim,
        num_image_text_embeds=num_image_text_embeds,
        key=k_mod,
    )
    # Exercise non-trivial LayerNorm affine params as well.
    module.ln_gamma = jax.random.normal(k_g, (cross_attention_dim,), jnp.float32)
    module.ln_beta = jax.random.normal(k_b, (cross_attention_dim,), jnp.float32)

    x = jax.random.normal(k_x, (batch, image_embed_dim), jnp.float32)
    ref = _reference(module, x)

    # Case 1: auto token grouping (here T == N -> single grid step, exercises
    # the multi-token LayerNorm path inside the kernel).
    out = jax.block_until_ready(module(x))
    assert out.shape == (batch, num_image_text_embeds, cross_attention_dim)
    np.testing.assert_allclose(np.asarray(out), np.asarray(ref),
                               rtol=1e-4, atol=1e-4)

    # Case 2: force one token per step (grid of N steps, exercises the
    # pipelined multi-step path with weight-tile streaming).
    out1 = jax.block_until_ready(module(x, tokens_per_block=1))
    np.testing.assert_allclose(np.asarray(out1), np.asarray(ref),
                               rtol=1e-4, atol=1e-4)

    print("KERNEL_OK")
</pallas_src>

<mosaic_0001>
module attributes {stable_mosaic.version = 11 : i64} {
  func.func @_image_proj_kernel(%arg0: i32, %arg1: memref<2x64xf32, #tpu.memory_space<vmem>>, %arg2: memref<64x512xf32, #tpu.memory_space<vmem>>, %arg3: memref<1x512xf32, #tpu.memory_space<vmem>>, %arg4: memref<1x128xf32, #tpu.memory_space<vmem>>, %arg5: memref<1x128xf32, #tpu.memory_space<vmem>>, %arg6: memref<2x512xf32, #tpu.memory_space<vmem>>) attributes {dimension_semantics = [#tpu.dimension_semantics<parallel>], iteration_bounds = array<i64: 1>, scalar_prefetch = 0 : i64, scratch_operands = 0 : i64, tpu.core_type = #tpu.core_type<tc>, window_params = [{pipeline_mode = #tpu.pipeline_mode<synchronous>, transform_indices = @transform_0, window_bounds = array<i64: 2, 64>}, {transform_indices = @transform_1, window_bounds = array<i64: 64, 512>}, {transform_indices = @transform_2, window_bounds = array<i64: 1, 512>}, {pipeline_mode = #tpu.pipeline_mode<synchronous>, transform_indices = @transform_3, window_bounds = array<i64: 1, 128>}, {pipeline_mode = #tpu.pipeline_mode<synchronous>, transform_indices = @transform_4, window_bounds = array<i64: 1, 128>}, {transform_indices = @transform_5, window_bounds = array<i64: 2, 512>}]} {
    %c0 = arith.constant 0 : index
    %c0_0 = arith.constant 0 : index
    %0 = vector.load %arg1[%c0, %c0_0] : memref<2x64xf32, #tpu.memory_space<vmem>>, vector<2x64xf32>
    %c0_1 = arith.constant 0 : index
    %c0_2 = arith.constant 0 : index
    %1 = vector.load %arg2[%c0_1, %c0_2] : memref<64x512xf32, #tpu.memory_space<vmem>>, vector<64x512xf32>
    %cst = arith.constant dense<0.000000e+00> : vector<2x512xf32>
    %2 = tpu.matmul %0, %1, %cst {dimension_numbers = #tpu.dot_dimension_numbers<[1], [0], [0], [1], [0, 0, 1, 1], [], []>} : vector<2x64xf32>, vector<64x512xf32>, vector<2x512xf32> -> vector<2x512xf32>
    %c0_3 = arith.constant 0 : index
    %c0_4 = arith.constant 0 : index
    %3 = vector.load %arg3[%c0_3, %c0_4] : memref<1x512xf32, #tpu.memory_space<vmem>>, vector<1x512xf32>
    %4 = vector.broadcast %3 : vector<1x512xf32> to vector<2x512xf32>
    %5 = arith.addf %2, %4 : vector<2x512xf32>
    %c0_5 = arith.constant 0 : index
    %c0_6 = arith.constant 0 : index
    %6 = vector.load %arg4[%c0_5, %c0_6] : memref<1x128xf32, #tpu.memory_space<vmem>>, vector<1x128xf32>
    %c0_7 = arith.constant 0 : index
    %c0_8 = arith.constant 0 : index
    %7 = vector.load %arg5[%c0_7, %c0_8] : memref<1x128xf32, #tpu.memory_space<vmem>>, vector<1x128xf32>
    %8 = vector.extract_strided_slice %5 {offsets = [0, 0], sizes = [2, 128], strides = [1, 1]} : vector<2x512xf32> to vector<2x128xf32>
    %cst_9 = arith.constant dense<0.000000e+00> : vector<2xf32>
    %9 = vector.multi_reduction <add>, %8, %cst_9 [1] : vector<2x128xf32> to vector<2xf32>
    %10 = vector.shape_cast %9 : vector<2xf32> to vector<2x1xf32>
    %cst_10 = arith.constant 1.280000e+02 : f32
    %11 = vector.broadcast %cst_10 : f32 to vector<2x1xf32>
    %12 = arith.divf %10, %11 : vector<2x1xf32>
    %13 = vector.broadcast %12 : vector<2x1xf32> to vector<2x128xf32>
    %14 = arith.subf %8, %13 : vector<2x128xf32>
    %15 = arith.mulf %14, %14 : vector<2x128xf32>
    %cst_11 = arith.constant dense<0.000000e+00> : vector<2xf32>
    %16 = vector.multi_reduction <add>, %15, %cst_11 [1] : vector<2x128xf32> to vector<2xf32>
    %17 = vector.shape_cast %16 : vector<2xf32> to vector<2x1xf32>
    %cst_12 = arith.constant 1.280000e+02 : f32
    %18 = vector.broadcast %cst_12 : f32 to vector<2x1xf32>
    %19 = arith.divf %17, %18 : vector<2x1xf32>
    %cst_13 = arith.constant 9.99999974E-6 : f32
    %20 = vector.broadcast %cst_13 : f32 to vector<2x1xf32>
    %21 = arith.addf %19, %20 : vector<2x1xf32>
    %22 = math.rsqrt %21 : vector<2x1xf32>
    %23 = vector.broadcast %22 : vector<2x1xf32> to vector<2x128xf32>
    %24 = arith.mulf %14, %23 : vector<2x128xf32>
    %25 = vector.broadcast %6 : vector<1x128xf32> to vector<2x128xf32>
    %26 = arith.mulf %24, %25 : vector<2x128xf32>
    %27 = vector.broadcast %7 : vector<1x128xf32> to vector<2x128xf32>
    %28 = arith.addf %26, %27 : vector<2x128xf32>
    %c0_14 = arith.constant 0 : index
    %c0_15 = arith.constant 0 : index
    %29 = vector.load %arg6[%c0_14, %c0_15] : memref<2x512xf32, #tpu.memory_space<vmem>>, vector<2x128xf32>
    tpu.vector_store %arg6[%c0_14, %c0_15], %28 {strides = array<i32>} : memref<2x512xf32, #tpu.memory_space<vmem>>, vector<2x128xf32>,
    %30 = vector.extract_strided_slice %5 {offsets = [0, 128], sizes = [2, 128], strides = [1, 1]} : vector<2x512xf32> to vector<2x128xf32>
    %cst_16 = arith.constant dense<0.000000e+00> : vector<2xf32>
    %31 = vector.multi_reduction <add>, %30, %cst_16 [1] : vector<2x128xf32> to vector<2xf32>
    %32 = vector.shape_cast %31 : vector<2xf32> to vector<2x1xf32>
    %cst_17 = arith.constant 1.280000e+02 : f32
    %33 = vector.broadcast %cst_17 : f32 to vector<2x1xf32>
    %34 = arith.divf %32, %33 : vector<2x1xf32>
    %35 = vector.broadcast %34 : vector<2x1xf32> to vector<2x128xf32>
    %36 = arith.subf %30, %35 : vector<2x128xf32>
    %37 = arith.mulf %36, %36 : vector<2x128xf32>
    %cst_18 = arith.constant dense<0.000000e+00> : vector<2xf32>
    %38 = vector.multi_reduction <add>, %37, %cst_18 [1] : vector<2x128xf32> to vector<2xf32>
    %39 = vector.shape_cast %38 : vector<2xf32> to vector<2x1xf32>
    %cst_19 = arith.constant 1.280000e+02 : f32
    %40 = vector.broadcast %cst_19 : f32 to vector<2x1xf32>
    %41 = arith.divf %39, %40 : vector<2x1xf32>
    %cst_20 = arith.constant 9.99999974E-6 : f32
    %42 = vector.broadcast %cst_20 : f32 to vector<2x1xf32>
    %43 = arith.addf %41, %42 : vector<2x1xf32>
    %44 = math.rsqrt %43 : vector<2x1xf32>
    %45 = vector.broadcast %44 : vector<2x1xf32> to vector<2x128xf32>
    %46 = arith.mulf %36, %45 : vector<2x128xf32>
    %47 = vector.broadcast %6 : vector<1x128xf32> to vector<2x128xf32>
    %48 = arith.mulf %46, %47 : vector<2x128xf32>
    %49 = vector.broadcast %7 : vector<1x128xf32> to vector<2x128xf32>
    %50 = arith.addf %48, %49 : vector<2x128xf32>
    %c0_21 = arith.constant 0 : index
    %c128 = arith.constant 128 : index
    %51 = vector.load %arg6[%c0_21, %c128] : memref<2x512xf32, #tpu.memory_space<vmem>>, vector<2x128xf32>
    tpu.vector_store %arg6[%c0_21, %c128], %50 {strides = array<i32>} : memref<2x512xf32, #tpu.memory_space<vmem>>, vector<2x128xf32>,
    %52 = vector.extract_strided_slice %5 {offsets = [0, 256], sizes = [2, 128], strides = [1, 1]} : vector<2x512xf32> to vector<2x128xf32>
    %cst_22 = arith.constant dense<0.000000e+00> : vector<2xf32>
    %53 = vector.multi_reduction <add>, %52, %cst_22 [1] : vector<2x128xf32> to vector<2xf32>
    %54 = vector.shape_cast %53 : vector<2xf32> to vector<2x1xf32>
    %cst_23 = arith.constant 1.280000e+02 : f32
    %55 = vector.broadcast %cst_23 : f32 to vector<2x1xf32>
    %56 = arith.divf %54, %55 : vector<2x1xf32>
    %57 = vector.broadcast %56 : vector<2x1xf32> to vector<2x128xf32>
    %58 = arith.subf %52, %57 : vector<2x128xf32>
    %59 = arith.mulf %58, %58 : vector<2x128xf32>
    %cst_24 = arith.constant dense<0.000000e+00> : vector<2xf32>
    %60 = vector.multi_reduction <add>, %59, %cst_24 [1] : vector<2x128xf32> to vector<2xf32>
    %61 = vector.shape_cast %60 : vector<2xf32> to vector<2x1xf32>
    %cst_25 = arith.constant 1.280000e+02 : f32
    %62 = vector.broadcast %cst_25 : f32 to vector<2x1xf32>
    %63 = arith.divf %61, %62 : vector<2x1xf32>
    %cst_26 = arith.constant 9.99999974E-6 : f32
    %64 = vector.broadcast %cst_26 : f32 to vector<2x1xf32>
    %65 = arith.addf %63, %64 : vector<2x1xf32>
    %66 = math.rsqrt %65 : vector<2x1xf32>
    %67 = vector.broadcast %66 : vector<2x1xf32> to vector<2x128xf32>
    %68 = arith.mulf %58, %67 : vector<2x128xf32>
    %69 = vector.broadcast %6 : vector<1x128xf32> to vector<2x128xf32>
    %70 = arith.mulf %68, %69 : vector<2x128xf32>
    %71 = vector.broadcast %7 : vector<1x128xf32> to vector<2x128xf32>
    %72 = arith.addf %70, %71 : vector<2x128xf32>
    %c0_27 = arith.constant 0 : index
    %c256 = arith.constant 256 : index
    %73 = vector.load %arg6[%c0_27, %c256] : memref<2x512xf32, #tpu.memory_space<vmem>>, vector<2x128xf32>
    tpu.vector_store %arg6[%c0_27, %c256], %72 {strides = array<i32>} : memref<2x512xf32, #tpu.memory_space<vmem>>, vector<2x128xf32>,
    %74 = vector.extract_strided_slice %5 {offsets = [0, 384], sizes = [2, 128], strides = [1, 1]} : vector<2x512xf32> to vector<2x128xf32>
    %cst_28 = arith.constant dense<0.000000e+00> : vector<2xf32>
    %75 = vector.multi_reduction <add>, %74, %cst_28 [1] : vector<2x128xf32> to vector<2xf32>
    %76 = vector.shape_cast %75 : vector<2xf32> to vector<2x1xf32>
    %cst_29 = arith.constant 1.280000e+02 : f32
    %77 = vector.broadcast %cst_29 : f32 to vector<2x1xf32>
    %78 = arith.divf %76, %77 : vector<2x1xf32>
    %79 = vector.broadcast %78 : vector<2x1xf32> to vector<2x128xf32>
    %80 = arith.subf %74, %79 : vector<2x128xf32>
    %81 = arith.mulf %80, %80 : vector<2x128xf32>
    %cst_30 = arith.constant dense<0.000000e+00> : vector<2xf32>
    %82 = vector.multi_reduction <add>, %81, %cst_30 [1] : vector<2x128xf32> to vector<2xf32>
    %83 = vector.shape_cast %82 : vector<2xf32> to vector<2x1xf32>
    %cst_31 = arith.constant 1.280000e+02 : f32
    %84 = vector.broadcast %cst_31 : f32 to vector<2x1xf32>
    %85 = arith.divf %83, %84 : vector<2x1xf32>
    %cst_32 = arith.constant 9.99999974E-6 : f32
    %86 = vector.broadcast %cst_32 : f32 to vector<2x1xf32>
    %87 = arith.addf %85, %86 : vector<2x1xf32>
    %88 = math.rsqrt %87 : vector<2x1xf32>
    %89 = vector.broadcast %88 : vector<2x1xf32> to vector<2x128xf32>
    %90 = arith.mulf %80, %89 : vector<2x128xf32>
    %91 = vector.broadcast %6 : vector<1x128xf32> to vector<2x128xf32>
    %92 = arith.mulf %90, %91 : vector<2x128xf32>
    %93 = vector.broadcast %7 : vector<1x128xf32> to vector<2x128xf32>
    %94 = arith.addf %92, %93 : vector<2x128xf32>
    %c0_33 = arith.constant 0 : index
    %c384 = arith.constant 384 : index
    %95 = vector.load %arg6[%c0_33, %c384] : memref<2x512xf32, #tpu.memory_space<vmem>>, vector<2x128xf32>
    tpu.vector_store %arg6[%c0_33, %c384], %94 {strides = array<i32>} : memref<2x512xf32, #tpu.memory_space<vmem>>, vector<2x128xf32>,
    return
  }
  func.func @transform_0(%arg0: i32) -> (i32, i32) {
    %c0_i32 = arith.constant 0 : i32
    %c0_i32_0 = arith.constant 0 : i32
    %c0_i32_1 = arith.constant 0 : i32
    return %c0_i32, %c0_i32_0 : i32, i32
  }
  func.func @transform_1(%arg0: i32) -> (i32, i32) {
    %c0_i32 = arith.constant 0 : i32
    %c0_i32_0 = arith.constant 0 : i32
    return %c0_i32, %arg0 : i32, i32
  }
  func.func @transform_2(%arg0: i32) -> (i32, i32) {
    %c0_i32 = arith.constant 0 : i32
    %c0_i32_0 = arith.constant 0 : i32
    return %c0_i32, %arg0 : i32, i32
  }
  func.func @transform_3(%arg0: i32) -> (i32, i32) {
    %c0_i32 = arith.constant 0 : i32
    %c0_i32_0 = arith.constant 0 : i32
    %c0_i32_1 = arith.constant 0 : i32
    return %c0_i32, %c0_i32_0 : i32, i32
  }
  func.func @transform_4(%arg0: i32) -> (i32, i32) {
    %c0_i32 = arith.constant 0 : i32
    %c0_i32_0 = arith.constant 0 : i32
    %c0_i32_1 = arith.constant 0 : i32
    return %c0_i32, %c0_i32_0 : i32, i32
  }
  func.func @transform_5(%arg0: i32) -> (i32, i32) {
    %c0_i32 = arith.constant 0 : i32
    %c0_i32_0 = arith.constant 0 : i32
    return %c0_i32, %arg0 : i32, i32
  }
}

</mosaic_0001>

<bundles_post_ra>
// kernel: _image_projection_pallas.1
= control target key start
LH: loop header
LB: loop body
LE: loop exit
PB: predicated region body
PF: predicated region fallthrough
CT: control target
= control target key end

     0   :  { %10 = vsyncpa [#allocation3], 0  ;;  %s523_s0 = inlined_call_operand.hbm [shape: f32[2,64], index: 0, kind: input, shape index: {}]   ;;  %s524_s1 = inlined_call_operand.hbm [shape: f32[64,512], index: 1, kind: input, shape index: {}]   ;;  %s525_s2 = inlined_call_operand.hbm [shape: f32[1,512], index: 2, kind: input, shape index: {}]   ;;  %s526_s3 = inlined_call_operand.vmem [shape: f32[1,128], index: 3, kind: input, shape index: {}]   ;;  %s527_s4 = inlined_call_operand.vmem [shape: f32[1,128], index: 4, kind: input, shape index: {}]   ;;  %s528_s5 = inlined_call_operand.hbm [shape: f32[2,512], index: 5, kind: output, shape index: {}]  }
   0x1   :  { %11 = vsyncpa [#allocation6], 0 }
   0x2   :  { %12 = vsyncpa [#allocation4], 0  ;;  %s460_s18 = smov [#allocation5]  }
   0x3   :  { %s28_s19 = sshll.u32 %s460_s18, 4  ;;  %s29_s19 = int_to_ptr.vmem [resolvable:$true] %s28_s19 }
   0x4   :  { %s382_s20 = scalar_lea.vmem %s29_s19, 4096  ;;  %p387_p1 = scmp.lt.s32.totalorder %s29_s19, %s29_s19 }
   0x5   :  { %p383_p0 = scmp.ne.s32.totalorder %s29_s19, %s382_s20  ;;  %p388_p2 = scmp.lt.s32.totalorder %s382_s20, %s382_s20 }
   0x7   :  { %p389_p3 = por %p388_p2, %p387_p1 }
   0x9   :  { %p390_p4 = pnand %p389_p3, %p383_p0 }
   0xb   :  { %393 = shalt.err (!%p390_p4)
}
   0xc   :  { %s461_s21 = smov 512   ;;  %s462_s22 = smov 32  }
   0xd   :  { %34 = dma.hbm_to_vmem [thread:$0]  %s524_s1, 4096, %s29_s19, [#allocation6], %s461_s21, %s461_s21, %s462_s22  }
   0xe   :  { %s463_s25 = smov [#allocation2]   ;;  %s464_s27 = smov [#allocation7]  }
   0xf   :  { %s19_s26 = sshll.u32 %s463_s25, 4  ;;  %s41_s28 = sshll.u32 %s464_s27, 4  ;;  %s20_s26 = int_to_ptr.vmem [resolvable:$true] %s19_s26  ;;  %s42_s28 = int_to_ptr.vmem [resolvable:$true] %s41_s28 }
  0x10   :  { %s402_s29 = scalar_lea.vmem %s20_s26, 32  ;;  %p407_p6 = scmp.lt.s32.totalorder %s20_s26, %s20_s26 }
  0x11   :  { %p403_p5 = scmp.ne.s32.totalorder %s20_s26, %s402_s29  ;;  %p408_p7 = scmp.lt.s32.totalorder %s402_s29, %s402_s29 }
  0x13   :  { %p409_p8 = por %p408_p7, %p407_p6 }
  0x15   :  { %p410_p9 = pnand %p409_p8, %p403_p5 }
  0x17   :  { %413 = shalt.err (!%p410_p9)
}
  0x18   :  { %22 = dma.hbm_to_vmem [thread:$0]  %s523_s0, 32, %s20_s26, [#allocation3]  }
  0x19   :  { %s422_s7 = scalar_lea.vmem %s42_s28, 64  ;;  %p427_p11 = scmp.lt.s32.totalorder %s42_s28, %s42_s28 }
  0x1a   :  { %p423_p10 = scmp.ne.s32.totalorder %s42_s28, %s422_s7  ;;  %p428_p12 = scmp.lt.s32.totalorder %s422_s7, %s422_s7 }
  0x1c   :  { %p429_p13 = por %p428_p12, %p427_p11 }
  0x1e   :  { %p430_p0 = pnand %p429_p13, %p423_p10 }
  0x20   :  { %433 = shalt.err (!%p430_p0)
}
  0x21   :  { %44 = dma.hbm_to_vmem [thread:$0]  %s525_s2, 64, %s42_s28, [#allocation6]  }
  0x22   :  { %454 = dma.done.wait [#allocation3], 32  }
  0x23   :  { %455 = vsyncadd [#allocation3], 4294967264 }
  0x24   :  { %456 = dma.done.wait [#allocation6], 4160  }
  0x25   :  { %457 = vsyncadd [#allocation6], 4294963136  ;;  %v465_v0 = vmov 0.0   ;;  %v88_v1 = vld [vmem:[#allocation5 + $0xe8] sm:$0xff]  ;;  %v90_v2 = vld [vmem:[#allocation5 + $0xf8] sm:$0xff]  ;;  %vm113_vm0 = vcmask 523264   ;;  %v93_v34 = vlaneseq }
  0x26   :  { %181 = vmatprep.mubr.f32.mxu0 %v465_v0  ;;  %252 = vmatprep.mubr.f32.mxu1 %v465_v0  ;;  %v87_v3 = vld [vmem:[#allocation5 + $0xe0] sm:$0xff]  ;;  %v89_v4 = vld [vmem:[#allocation5 + $0xf0] sm:$0xff]  ;;  %v84_v5 = vld [vmem:[#allocation5 + $0xc8] sm:$0xff]  ;;  %vm261_vm1 = vcmask 1041408   ;;  %s466_s11 = smov [#allocation8]  }
  0x27   :  { %133 = vmatprep.subr.mxu0 %v88_v1  ;;  %204 = vmatprep.subr.mxu1 %v90_v2  ;;  %v86_v6 = vld [vmem:[#allocation5 + $0xd8] sm:$0xff]  ;;  %v83_v7 = vld [vmem:[#allocation5 + $0xc0] sm:$0xff]  ;;  %v85_v8 = vld [vmem:[#allocation5 + $0xd0] sm:$0xff]  ;;  %v94_v35 = vshrl.u32 %v93_v34, 7 }
  0x28   :  { %134 = vmatpush1.msra.mxu0 %v87_v3  ;;  %205 = vmatpush1.msra.mxu1 %v89_v4  ;;  %v80_v9 = vld [vmem:[#allocation5 + $0xa8] sm:$0xff]  ;;  %v82_v10 = vld [vmem:[#allocation5 + $0xb8] sm:$0xff]  ;;  %v79_v11 = vld [vmem:[#allocation5 + $0xa0] sm:$0xff] }
  0x29   :  { %135 = vmatprep.subr.mxu0 %v84_v5  ;;  %206 = vmatprep.subr.mxu1 %v86_v6  ;;  %v81_v12 = vld [vmem:[#allocation5 + $0xb0] sm:$0xff]  ;;  %v76_v13 = vld [vmem:[#allocation5 + $0x88] sm:$0xff]  ;;  %v78_v14 = vld [vmem:[#allocation5 + $0x98] sm:$0xff]  ;;  %v95_v36 = vsub.s32 0, %v94_v35  ;;  %v103_v37 = vsub.s32 2, %v94_v35  ;;  %v99_v39 = vsub.s32 1, %v94_v35 }
  0x2a   :  { %136 = vmatpush1.msra.mxu0 %v83_v7  ;;  %207 = vmatpush1.msra.mxu1 %v85_v8  ;;  %v75_v15 = vld [vmem:[#allocation5 + $0x80] sm:$0xff]  ;;  %v77_v16 = vld [vmem:[#allocation5 + $0x90] sm:$0xff]  ;;  %v72_v17 = vld [vmem:[#allocation5 + $0x68] sm:$0xff]  ;;  %v107_v40 = vsub.s32 3, %v94_v35 }
  0x2b   :  { %137 = vmatprep.subr.mxu0 %v80_v9  ;;  %208 = vmatprep.subr.mxu1 %v82_v10  ;;  %v74_v18 = vld [vmem:[#allocation5 + $0x78] sm:$0xff]  ;;  %v71_v19 = vld [vmem:[#allocation5 + $0x60] sm:$0xff]  ;;  %v73_v20 = vld [vmem:[#allocation5 + $0x70] sm:$0xff] }
  0x2c   :  { %138 = vmatpush1.msra.mxu0 %v79_v11  ;;  %209 = vmatpush1.msra.mxu1 %v81_v12  ;;  %v68_v21 = vld [vmem:[#allocation5 + $0x48] sm:$0xff]  ;;  %v70_v22 = vld [vmem:[#allocation5 + $0x58] sm:$0xff]  ;;  %v67_v23 = vld [vmem:[#allocation5 + $0x40] sm:$0xff] }
  0x2d   :  { %139 = vmatprep.subr.mxu0 %v76_v13  ;;  %210 = vmatprep.subr.mxu1 %v78_v14  ;;  %v69_v24 = vld [vmem:[#allocation5 + $0x50] sm:$0xff]  ;;  %v64_v25 = vld [vmem:[#allocation5 + $0x28] sm:$0xff]  ;;  %v66_v26 = vld [vmem:[#allocation5 + $0x38] sm:$0xff] }
  0x2e   :  { %140 = vmatpush1.msra.mxu0 %v75_v15  ;;  %211 = vmatpush1.msra.mxu1 %v77_v16  ;;  %v63_v27 = vld [vmem:[#allocation5 + $0x20] sm:$0xff]  ;;  %v65_v28 = vld [vmem:[#allocation5 + $0x30] sm:$0xff]  ;;  %v60_v29 = vld [vmem:[#allocation5 + $0x8] sm:$0xff] }
  0x2f   :  { %141 = vmatprep.subr.mxu0 %v72_v17  ;;  %212 = vmatprep.subr.mxu1 %v74_v18  ;;  %v62_v30 = vld [vmem:[#allocation5 + $0x18] sm:$0xff]  ;;  %v59_v31 = vld [vmem:[#allocation5] sm:$0xff]  ;;  %v61_v32 = vld [vmem:[#allocation5 + $0x10] sm:$0xff] }
  0x30   :  { %142 = vmatpush1.msra.mxu0 %v71_v19  ;;  %213 = vmatpush1.msra.mxu1 %v73_v20  ;;  %v58_v33 = vld [vmem:[#allocation2] sm:$0x3]  ;;  %v91_v38 = vld [vmem:[#allocation7] sm:$0xf] }
  0x31   :  { %143 = vmatprep.subr.mxu0 %v68_v21  ;;  %214 = vmatprep.subr.mxu1 %v70_v22  ;;  %v96_v41 = vrot.slane %v91_v38, %v95_v36  ;;  %v104_v42 = vrot.slane %v91_v38, %v103_v37  ;;  %v100_v43 = vrot.slane %v91_v38, %v99_v39 }
  0x32   :  { %144 = vmatpush1.msra.mxu0 %v67_v23  ;;  %215 = vmatpush1.msra.mxu1 %v69_v24  ;;  %v108_v44 = vrot.slane %v91_v38, %v107_v40 }
  0x33   :  { %145 = vmatprep.subr.mxu0 %v64_v25  ;;  %216 = vmatprep.subr.mxu1 %v66_v26  ;;  %v357_v26 = vld [vmem:[%s526_s3] ss:$0 sm:$0xff]  ;;  %s345_s3 = sshll.u32 %s466_s11, 4  ;;  %s346_s3 = int_to_ptr.vmem [resolvable:$true] %s345_s3 }
  0x34   :  { %146 = vmatpush1.msra.mxu0 %v63_v27  ;;  %217 = vmatpush1.msra.mxu1 %v65_v28  ;;  %v358_v28 = vld [vmem:[%s527_s4] ss:$0 sm:$0xff]  ;;  %s434_s4 = scalar_lea.vmem %s346_s3, 128  ;;  %p439_p2 = scmp.lt.s32.totalorder %s346_s3, %s346_s3 }
  0x35   :  { %147 = vmatprep.subr.mxu0 %v60_v29  ;;  %218 = vmatprep.subr.mxu1 %v62_v30  ;;  %p435_p1 = scmp.ne.s32.totalorder %s346_s3, %s434_s4  ;;  %p440_p3 = scmp.lt.s32.totalorder %s434_s4, %s434_s4 }
  0x36   :  { %148 = vmatpush1.msra.mxu0 %v59_v31  ;;  %219 = vmatpush1.msra.mxu1 %v61_v32 }
  0x37   :  { %355 = vmatmul.mubr.msk.f32.vlgmr.msra.gmra.mxu0 %vm113_vm0, %v58_v33  ;;  %356 = vmatmul.mubr.msk.f32.vlgmr.msra.gmra.mxu1 %vm113_vm0, %v58_v33  ;;  %p441_p4 = por %p440_p3, %p439_p2 }
  0x39   :  { %p442_p5 = pnand %p441_p4, %p435_p1 }
  0xf7   :  { %v183_v45 = vpop.f32.mrf.mxu0  ;;  %v254_v46 = vpop.f32.mrf.mxu1 }
  0xf8   :  { %v184_v47 = vadd.f32 %v183_v45, %v96_v41  ;;  %v255_v48 = vadd.f32 %v254_v46, %v104_v42 }
  0xf9   :  { %v185_v49 = vpop.f32.mrf.mxu0  ;;  %v256_v50 = vpop.f32.mrf.mxu1 }
  0xfa   :  { %v186_v51 = vadd.f32 %v185_v49, %v100_v43  ;;  %v257_v52 = vadd.f32 %v256_v50, %v108_v44  ;;  %v307_v53 = vsel %vm261_vm1, %v255_v48, 0.0  ;;  %v262_v54 = vsel %vm261_vm1, %v184_v47, 0.0 }
  0xfb   :  { %308 = vadd.xlane.f32.xlu1 %v307_v53  ;;  %263 = vadd.xlane.f32.xlu0 %v262_v54 }
  0xfc   :  { %v323_v55 = vsel %vm261_vm1, %v257_v52, 0.0  ;;  %v291_v56 = vsel %vm261_vm1, %v186_v51, 0.0 }
  0xff   :  { %324 = vadd.xlane.f32.xlu1 %v323_v55  ;;  %292 = vadd.xlane.f32.xlu0 %v291_v56 }
 0x184   :  { %v309_v57 = vpop.xlane.xlu1 %308  ;;  %v264_v58 = vpop.xlane.xlu0 %263 }
 0x185   :  { %v310_v59 = vmul.f32 0.0078125, %v309_v57  ;;  %v266_v60 = vmul.f32 0.0078125, %v264_v58 }
 0x187   :  { %v311_v61 = vsub.f32 %v255_v48, %v310_v59  ;;  %v267_v62 = vsub.f32 %v184_v47, %v266_v60 }
 0x188   :  { %v325_v63 = vpop.xlane.xlu1 %324  ;;  %v293_v0 = vpop.xlane.xlu0 %292 }
 0x189   :  { %v326_v1 = vmul.f32 0.0078125, %v325_v63  ;;  %v294_v2 = vmul.f32 0.0078125, %v293_v0  ;;  %v268_v3 = vmul.f32 %v267_v62, %v267_v62  ;;  %v312_v7 = vmul.f32 %v311_v61, %v311_v61 }
 0x18b   :  { %v327_v4 = vsub.f32 %v257_v52, %v326_v1  ;;  %v295_v5 = vsub.f32 %v186_v51, %v294_v2  ;;  %v269_v6 = vsel %vm261_vm1, %v268_v3, 0.0  ;;  %v313_v9 = vsel %vm261_vm1, %v312_v7, 0.0 }
 0x18c   :  { %270 = vadd.xlane.f32.xlu0 %v269_v6 }
 0x18d   :  { %v296_v8 = vmul.f32 %v295_v5, %v295_v5  ;;  %v328_v11 = vmul.f32 %v327_v4, %v327_v4 }
 0x18f   :  { %v297_v10 = vsel %vm261_vm1, %v296_v8, 0.0  ;;  %v329_v12 = vsel %vm261_vm1, %v328_v11, 0.0 }
 0x190   :  { %314 = vadd.xlane.f32.xlu0 %v313_v9  ;;  %298 = vadd.xlane.f32.xlu1 %v297_v10 }
 0x194   :  { %330 = vadd.xlane.f32.xlu1 %v329_v12 }
 0x215   :  { %v271_v13 = vpop.xlane.xlu0 %270 }
 0x216   :  { %v272_v14 = vmul.f32 0.0078125, %v271_v13 }
 0x218   :  { %v273_v15 = vadd.f32 1e-05, %v272_v14 }
 0x219   :  { %v299_v16 = vpop.xlane.xlu1 %298  ;;  %v315_v17 = vpop.xlane.xlu0 %314 }
 0x21a   :  { %366 = vrsqrt.f32 %v273_v15  ;;  %v300_v18 = vmul.f32 0.0078125, %v299_v16  ;;  %v316_v19 = vmul.f32 0.0078125, %v315_v17 }
 0x21c   :  { %v301_v20 = vadd.f32 1e-05, %v300_v18  ;;  %v317_v21 = vadd.f32 1e-05, %v316_v19 }
 0x21d   :  { %v331_v22 = vpop.xlane.xlu1 %330 }
 0x21e   :  { %368 = vrsqrt.f32 %v301_v20  ;;  %v332_v23 = vmul.f32 0.0078125, %v331_v22 }
 0x21f   :  { %370 = vrsqrt.f32 %v317_v21 }
 0x220   :  { %v333_v24 = vadd.f32 1e-05, %v332_v23 }
 0x222   :  { %372 = vrsqrt.f32 %v333_v24 }
 0x227   :  { %v367_v25 = vpop.eup %366 }
 0x228   :  { %v275_v27 = vmul.f32 %v367_v25, %v267_v62 }
 0x22a   :  { %v282_v29 = vmul.f32 %v357_v26, %v275_v27 }
 0x22b   :  { %v369_v30 = vpop.eup %368 }
 0x22c   :  { %v371_v31 = vpop.eup %370  ;;  %v289_v32 = vadd.f32 %v358_v28, %v282_v29  ;;  %v303_v33 = vmul.f32 %v369_v30, %v295_v5 }
 0x22d   :  { %v319_v34 = vmul.f32 %v371_v31, %v311_v61 }
 0x22e   :  { %290 = vst [vmem:[#allocation8] sm:$0x3] %v289_v32  ;;  %v304_v35 = vmul.f32 %v357_v26, %v303_v33 }
 0x22f   :  { %v373_v36 = vpop.eup %372  ;;  %v320_v37 = vmul.f32 %v357_v26, %v319_v34 }
 0x230   :  { %v305_v38 = vadd.f32 %v358_v28, %v304_v35  ;;  %v335_v39 = vmul.f32 %v373_v36, %v327_v4 }
 0x231   :  { %v321_v40 = vadd.f32 %v358_v28, %v320_v37 }
 0x232   :  { %306 = vst [vmem:[#allocation8 + $0x2] sm:$0x3] %v305_v38  ;;  %v336_v41 = vmul.f32 %v357_v26, %v335_v39 }
 0x233   :  { %322 = vst [vmem:[#allocation8 + $0x4] sm:$0x3] %v321_v40 }
 0x234   :  { %v337_v42 = vadd.f32 %v358_v28, %v336_v41 }
 0x236   :  { %338 = vst [vmem:[#allocation8 + $0x6] sm:$0x3] %v337_v42 }
 0x237   :  { %445 = shalt.err (!%p442_p5)
}
 0x238   :  { %348 = dma.vmem_to_hbm [thread:$0]  %s346_s3, 128, %s528_s5, [#allocation4]  }
 0x239   :  { %458 = dma.done.wait [#allocation4], 128  }
 0x23a   :  { %459 = vsyncadd [#allocation4], 4294967168 }
 0x23b   :  { %352 = vsyncpa [#allocation3], 1 }
 0x23c   :  { %353 = vsyncpa [#allocation6], 1 }
 0x23d   :  { %354 = vsyncpa [#allocation4], 1 }

</bundles_post_ra>
